<compile_context>
chip_gen: v7x
topology: tpu7x:2x2x1
jax: 0.10.0
libtpu: 0.0.40
codegen_flags: <defaults>
</compile_context>

<pallas_src>
import jax
import jax.numpy as jnp
from jax.experimental import pallas as pl
from jax.experimental.pallas import tpu as pltpu


# ---------------------------------------------------------------------------
# Shared gate math (traced inside both kernels).
# ---------------------------------------------------------------------------
def _lstm_gates(x, h, c, wx_ref, wh_ref, b_ref):
    """x:[B,I] h:[B,H] c:[B,H] (f32) -> (h_next, c_next) in f32."""
    H = c.shape[-1]
    # Two fused, lane-dense MXU matmuls + fused bias add: [B, 4H]
    pre = (jnp.dot(x, wx_ref[...], preferred_element_type=jnp.float32)
           + jnp.dot(h, wh_ref[...], preferred_element_type=jnp.float32)
           + b_ref[...])
    # Static lane slices; gate order (i, f, g, o).
    i = jax.nn.sigmoid(pre[:, 0 * H:1 * H])
    f = jax.nn.sigmoid(pre[:, 1 * H:2 * H])
    g = jnp.tanh(pre[:, 2 * H:3 * H])
    o = jax.nn.sigmoid(pre[:, 3 * H:4 * H])
    c_next = f * c + i * g
    h_next = o * jnp.tanh(c_next)
    return h_next, c_next


# ---------------------------------------------------------------------------
# Single-step LSTM cell kernel (matches the PyTorch module's forward).
# ---------------------------------------------------------------------------
def lstm_cell_kernel(x_ref, h_ref, c_ref, wx_ref, wh_ref, b_ref, hc_out_ref):
    x = x_ref[...]                               # [B, I]
    h = h_ref[...].astype(jnp.float32)           # [B, H]
    c = c_ref[...].astype(jnp.float32)           # [B, H]
    h_next, c_next = _lstm_gates(x, h, c, wx_ref, wh_ref, b_ref)
    # Single output slab: [B, 2H] = [h_next | c_next]  (one store DMA)
    hc_out_ref[...] = jnp.concatenate([h_next, c_next], axis=-1).astype(
        hc_out_ref.dtype)


def lstm_cell(x, h, c, wx, wh, b):
    """Single LSTM cell step.

    x: [B, I], h: [B, H], c: [B, H]
    wx: [I, 4H], wh: [H, 4H], b: [1, 4H]  (gate order i, f, g, o; b = bx + bh)
    returns (h_next, c_next), each [B, H].
    """
    B, H = h.shape
    vmem = pl.BlockSpec(memory_space=pltpu.MemorySpace.VMEM)
    hc = pl.pallas_call(
        lstm_cell_kernel,
        out_shape=jax.ShapeDtypeStruct((B, 2 * H), x.dtype),
        in_specs=[vmem] * 6,
        out_specs=vmem,
    )(x, h, c, wx, wh, b)
    return hc[:, :H], hc[:, H:]


# ---------------------------------------------------------------------------
# Full-sequence kernel: one pallas_call, grid=(T,), weights VMEM-resident,
# recurrent state held in VMEM scratch.  This is how the cell is actually
# used by TextLSTM and removes per-step launch + weight re-DMA overhead.
# ---------------------------------------------------------------------------
def lstm_seq_kernel(x_ref, h0_ref, c0_ref, wx_ref, wh_ref, b_ref,
                    hseq_ref, hclast_ref, h_st, c_st):
    t = pl.program_id(0)

    @pl.when(t == 0)
    def _():
        h_st[...] = h0_ref[...].astype(jnp.float32)
        c_st[...] = c0_ref[...].astype(jnp.float32)

    x = x_ref[0]                                  # [B, I]  (block is [1,B,I])
    h_next, c_next = _lstm_gates(x, h_st[...], c_st[...], wx_ref, wh_ref, b_ref)

    h_st[...] = h_next
    c_st[...] = c_next
    hseq_ref[0] = h_next.astype(hseq_ref.dtype)
    # Same block index every step -> resident; last step's write is returned.
    hclast_ref[...] = jnp.concatenate([h_next, c_next], axis=-1).astype(
        hclast_ref.dtype)


def lstm_sequence(x_seq, h0, c0, wx, wh, b):
    """Run the LSTM cell over a whole sequence in one kernel.

    x_seq: [T, B, I], h0/c0: [B, H]
    returns (h_seq [T, B, H], h_last [B, H], c_last [B, H])
    """
    T, B, I = x_seq.shape
    H = h0.shape[-1]
    full = lambda t: (0, 0)
    grid_spec = pltpu.PrefetchScalarGridSpec(
        num_scalar_prefetch=0,
        grid=(T,),
        in_specs=[
            pl.BlockSpec((1, B, I), lambda t: (t, 0, 0)),   # x_t streamed
            pl.BlockSpec((B, H), full),                      # h0 (step 0 only)
            pl.BlockSpec((B, H), full),                      # c0
            pl.BlockSpec((I, 4 * H), full),                  # wx resident
            pl.BlockSpec((H, 4 * H), full),                  # wh resident
            pl.BlockSpec((1, 4 * H), full),                  # b resident
        ],
        out_specs=[
            pl.BlockSpec((1, B, H), lambda t: (t, 0, 0)),    # per-step h
            pl.BlockSpec((B, 2 * H), full),                  # final [h|c]
        ],
        scratch_shapes=[
            pltpu.VMEM((B, H), jnp.float32),                 # h state
            pltpu.VMEM((B, H), jnp.float32),                 # c state
        ],
    )
    h_seq, hc_last = pl.pallas_call(
        lstm_seq_kernel,
        out_shape=(jax.ShapeDtypeStruct((T, B, H), x_seq.dtype),
                   jax.ShapeDtypeStruct((B, 2 * H), x_seq.dtype)),
        grid_spec=grid_spec,
        compiler_params=pltpu.CompilerParams(
            dimension_semantics=("arbitrary",)),             # true recurrence
    )(x_seq, h0, c0, wx, wh, b)
    return h_seq, hc_last[:, :H], hc_last[:, H:]


# ---------------------------------------------------------------------------
# Parameter packing + pure-JAX references.
# ---------------------------------------------------------------------------
def pack_lstm_params(w_in, b_in, w_hid, b_hid):
    """Pack PyTorch-style per-gate Linear params into the fused layout.

    w_in / w_hid : lists of 4 weights in PyTorch [out, in] layout (i, f, g, o).
    b_in / b_hid : lists of 4 bias vectors [H].
    Returns wx [I, 4H], wh [H, 4H], b [1, 4H].
    """
    wx = jnp.concatenate([w.T for w in w_in], axis=1)
    wh = jnp.concatenate([w.T for w in w_hid], axis=1)
    b = jnp.concatenate([bi + bh for bi, bh in zip(b_in, b_hid)])[None, :]
    return wx, wh, b


def lstm_cell_ref(x, h, c, w_in, b_in, w_hid, b_hid):
    """Pure-JAX reference mirroring the PyTorch forward (8 per-gate Linears)."""
    def lin(v, w, b):
        return v @ w.T + b

    i = jax.nn.sigmoid(lin(x, w_in[0], b_in[0]) + lin(h, w_hid[0], b_hid[0]))
    f = jax.nn.sigmoid(lin(x, w_in[1], b_in[1]) + lin(h, w_hid[1], b_hid[1]))
    g = jnp.tanh(lin(x, w_in[2], b_in[2]) + lin(h, w_hid[2], b_hid[2]))
    o = jax.nn.sigmoid(lin(x, w_in[3], b_in[3]) + lin(h, w_hid[3], b_hid[3]))
    c_next = f * c + i * g
    h_next = o * jnp.tanh(c_next)
    return h_next, c_next


def lstm_sequence_ref(x_seq, h0, c0, w_in, b_in, w_hid, b_hid):
    h, c = h0, c0
    hs = []
    for t in range(x_seq.shape[0]):
        h, c = lstm_cell_ref(x_seq[t], h, c, w_in, b_in, w_hid, b_hid)
        hs.append(h)
    return jnp.stack(hs, axis=0), h, c


if __name__ == "__main__":
    # Small shapes consistent with the module: batch=2, input=16, hidden=32,
    # sequence length 8 for the fused-sequence kernel.
    B, I, H, T = 2, 16, 32, 8
    key = jax.random.PRNGKey(0)
    keys = jax.random.split(key, 20)

    x = jax.random.normal(keys[0], (B, I), dtype=jnp.float32)
    h = jax.random.normal(keys[1], (B, H), dtype=jnp.float32)
    c = jax.random.normal(keys[2], (B, H), dtype=jnp.float32)
    x_seq = jax.random.normal(keys[19], (T, B, I), dtype=jnp.float32)

    # Per-gate nn.Linear-style params (PyTorch [out, in] layout, uniform init).
    bound_x = 1.0 / jnp.sqrt(I)
    bound_h = 1.0 / jnp.sqrt(H)
    w_in, b_in, w_hid, b_hid = [], [], [], []
    for g_idx in range(4):
        w_in.append(jax.random.uniform(keys[3 + 4 * g_idx], (H, I),
                                       dtype=jnp.float32,
                                       minval=-bound_x, maxval=bound_x))
        b_in.append(jax.random.uniform(keys[4 + 4 * g_idx], (H,),
                                       dtype=jnp.float32,
                                       minval=-bound_x, maxval=bound_x))
        w_hid.append(jax.random.uniform(keys[5 + 4 * g_idx], (H, H),
                                        dtype=jnp.float32,
                                        minval=-bound_h, maxval=bound_h))
        b_hid.append(jax.random.uniform(keys[6 + 4 * g_idx], (H,),
                                        dtype=jnp.float32,
                                        minval=-bound_h, maxval=bound_h))

    wx, wh, b = pack_lstm_params(w_in, b_in, w_hid, b_hid)

    # --- Single step (the module's forward) ---
    h_next, c_next = jax.block_until_ready(lstm_cell(x, h, c, wx, wh, b))
    h_ref, c_ref = lstm_cell_ref(x, h, c, w_in, b_in, w_hid, b_hid)
    assert jnp.allclose(h_next, h_ref, atol=1e-5, rtol=1e-5)
    assert jnp.allclose(c_next, c_ref, atol=1e-5, rtol=1e-5)

    # --- Full sequence in one kernel (weights resident, state in VMEM) ---
    h_seq, h_last, c_last = jax.block_until_ready(
        lstm_sequence(x_seq, h, c, wx, wh, b))
    h_seq_r, h_last_r, c_last_r = lstm_sequence_ref(
        x_seq, h, c, w_in, b_in, w_hid, b_hid)
    assert jnp.allclose(h_seq, h_seq_r, atol=1e-5, rtol=1e-5)
    assert jnp.allclose(h_last, h_last_r, atol=1e-5, rtol=1e-5)
    assert jnp.allclose(c_last, c_last_r, atol=1e-5, rtol=1e-5)

    print("KERNEL_OK")
</pallas_src>

<mosaic_0001>
module attributes {stable_mosaic.version = 11 : i64} {
  func.func @lstm_cell_kernel(%arg0: memref<2x16xf32, #tpu.memory_space<vmem>>, %arg1: memref<2x32xf32, #tpu.memory_space<vmem>>, %arg2: memref<2x32xf32, #tpu.memory_space<vmem>>, %arg3: memref<16x128xf32, #tpu.memory_space<vmem>>, %arg4: memref<32x128xf32, #tpu.memory_space<vmem>>, %arg5: memref<1x128xf32, #tpu.memory_space<vmem>>, %arg6: memref<2x64xf32, #tpu.memory_space<vmem>>) attributes {dimension_semantics = [], scalar_prefetch = 0 : i64, scratch_operands = 0 : i64, tpu.core_type = #tpu.core_type<tc>} {
    %c0 = arith.constant 0 : index
    %c0_0 = arith.constant 0 : index
    %0 = vector.load %arg0[%c0, %c0_0] : memref<2x16xf32, #tpu.memory_space<vmem>>, vector<2x16xf32>
    %c0_1 = arith.constant 0 : index
    %c0_2 = arith.constant 0 : index
    %1 = vector.load %arg1[%c0_1, %c0_2] : memref<2x32xf32, #tpu.memory_space<vmem>>, vector<2x32xf32>
    %c0_3 = arith.constant 0 : index
    %c0_4 = arith.constant 0 : index
    %2 = vector.load %arg2[%c0_3, %c0_4] : memref<2x32xf32, #tpu.memory_space<vmem>>, vector<2x32xf32>
    %c0_5 = arith.constant 0 : index
    %c0_6 = arith.constant 0 : index
    %3 = vector.load %arg3[%c0_5, %c0_6] : memref<16x128xf32, #tpu.memory_space<vmem>>, vector<16x128xf32>
    %cst = arith.constant dense<0.000000e+00> : vector<2x128xf32>
    %4 = tpu.matmul %0, %3, %cst {dimension_numbers = #tpu.dot_dimension_numbers<[1], [0], [0], [1], [0, 0, 1, 1], [], []>} : vector<2x16xf32>, vector<16x128xf32>, vector<2x128xf32> -> vector<2x128xf32>
    %c0_7 = arith.constant 0 : index
    %c0_8 = arith.constant 0 : index
    %5 = vector.load %arg4[%c0_7, %c0_8] : memref<32x128xf32, #tpu.memory_space<vmem>>, vector<32x128xf32>
    %cst_9 = arith.constant dense<0.000000e+00> : vector<2x128xf32>
    %6 = tpu.matmul %1, %5, %cst_9 {dimension_numbers = #tpu.dot_dimension_numbers<[1], [0], [0], [1], [0, 0, 1, 1], [], []>} : vector<2x32xf32>, vector<32x128xf32>, vector<2x128xf32> -> vector<2x128xf32>
    %7 = arith.addf %4, %6 : vector<2x128xf32>
    %c0_10 = arith.constant 0 : index
    %c0_11 = arith.constant 0 : index
    %8 = vector.load %arg5[%c0_10, %c0_11] : memref<1x128xf32, #tpu.memory_space<vmem>>, vector<1x128xf32>
    %9 = vector.broadcast %8 : vector<1x128xf32> to vector<2x128xf32>
    %10 = arith.addf %7, %9 : vector<2x128xf32>
    %11 = vector.extract_strided_slice %10 {offsets = [0, 0], sizes = [2, 32], strides = [1, 1]} : vector<2x128xf32> to vector<2x32xf32>
    %12 = arith.negf %11 : vector<2x32xf32>
    %13 = math.exp %12 : vector<2x32xf32>
    %cst_12 = arith.constant 1.000000e+00 : f32
    %14 = vector.broadcast %cst_12 : f32 to vector<2x32xf32>
    %15 = arith.addf %14, %13 : vector<2x32xf32>
    %16 = arith.divf %14, %15 : vector<2x32xf32>
    %17 = vector.extract_strided_slice %10 {offsets = [0, 32], sizes = [2, 32], strides = [1, 1]} : vector<2x128xf32> to vector<2x32xf32>
    %18 = arith.negf %17 : vector<2x32xf32>
    %19 = math.exp %18 : vector<2x32xf32>
    %cst_13 = arith.constant 1.000000e+00 : f32
    %20 = vector.broadcast %cst_13 : f32 to vector<2x32xf32>
    %21 = arith.addf %20, %19 : vector<2x32xf32>
    %22 = arith.divf %20, %21 : vector<2x32xf32>
    %23 = vector.extract_strided_slice %10 {offsets = [0, 64], sizes = [2, 32], strides = [1, 1]} : vector<2x128xf32> to vector<2x32xf32>
    %24 = math.tanh %23 : vector<2x32xf32>
    %25 = vector.extract_strided_slice %10 {offsets = [0, 96], sizes = [2, 32], strides = [1, 1]} : vector<2x128xf32> to vector<2x32xf32>
    %26 = arith.negf %25 : vector<2x32xf32>
    %27 = math.exp %26 : vector<2x32xf32>
    %cst_14 = arith.constant 1.000000e+00 : f32
    %28 = vector.broadcast %cst_14 : f32 to vector<2x32xf32>
    %29 = arith.addf %28, %27 : vector<2x32xf32>
    %30 = arith.divf %28, %29 : vector<2x32xf32>
    %31 = arith.mulf %22, %2 : vector<2x32xf32>
    %32 = arith.mulf %16, %24 : vector<2x32xf32>
    %33 = arith.addf %31, %32 : vector<2x32xf32>
    %34 = math.tanh %33 : vector<2x32xf32>
    %35 = arith.mulf %30, %34 : vector<2x32xf32>
    %36 = tpu.concatenate %35, %33 in 1 : vector<2x32xf32>, vector<2x32xf32> -> vector<2x64xf32>
    %c0_15 = arith.constant 0 : index
    %c0_16 = arith.constant 0 : index
    %37 = vector.load %arg6[%c0_15, %c0_16] : memref<2x64xf32, #tpu.memory_space<vmem>>, vector<2x64xf32>
    tpu.vector_store %arg6[%c0_15, %c0_16], %36 {strides = array<i32>} : memref<2x64xf32, #tpu.memory_space<vmem>>, vector<2x64xf32>,
    return
  }
}

</mosaic_0001>

<bundles_post_ra>
// kernel: tpu_custom_call.1
= control target key start
LH: loop header
LB: loop body
LE: loop exit
PB: predicated region body
PF: predicated region fallthrough
CT: control target
= control target key end

     0   :  { %11 = vsyncpa [#allocation3], 0  ;;  %s542_s0 = inlined_call_operand.hbm [shape: f32[2,16], index: 0, kind: input, shape index: {}]   ;;  %s543_s1 = inlined_call_operand.vmem [shape: f32[2,32], index: 1, kind: input, shape index: {}]   ;;  %s544_s2 = inlined_call_operand.vmem [shape: f32[2,32], index: 2, kind: input, shape index: {}]   ;;  %s545_s3 = inlined_call_operand.hbm [shape: f32[16,128], index: 3, kind: input, shape index: {}]   ;;  %s546_s4 = inlined_call_operand.hbm [shape: f32[32,128], index: 4, kind: input, shape index: {}]   ;;  %s547_s5 = inlined_call_operand.vmem [shape: f32[1,128], index: 5, kind: input, shape index: {}]   ;;  %s548_s6 = inlined_call_operand.hbm [shape: f32[2,64], index: 6, kind: output, shape index: {}]  }
   0x1   :  { %12 = vsyncpa [#allocation6], 0 }
   0x2   :  { %13 = vsyncpa [#allocation4], 0  ;;  %s431_s21 = smov [#allocation5]   ;;  %s337_s25 = scalar_lea.hbm %s545_s3, 256 }
   0x3   :  { %s33_s22 = sshll.u32 %s431_s21, 4  ;;  %p338_p0 = scmp.ne.s32.totalorder %s545_s3, %s337_s25  ;;  %s34_s22 = int_to_ptr.vmem [resolvable:$true] %s33_s22 }
   0x4   :  { %p341_p1 = scmp.lt.u32.totalorder %s337_s25, %s545_s3 }
   0x6   :  { %p343_p2 = pnand %p341_p1, %p338_p0 }
   0x8   :  { %346 = shalt.err (!%p343_p2)
}
   0x9   :  { %s347_s30 = scalar_lea.vmem %s34_s22, 256  ;;  %p352_p4 = scmp.lt.s32.totalorder %s34_s22, %s34_s22 }
   0xa   :  { %p348_p3 = scmp.ne.s32.totalorder %s34_s22, %s347_s30  ;;  %p353_p5 = scmp.lt.s32.totalorder %s347_s30, %s347_s30 }
   0xc   :  { %p354_p6 = por %p353_p5, %p352_p4 }
   0xe   :  { %p355_p7 = pnand %p354_p6, %p348_p3 }
  0x10   :  { %358 = shalt.err (!%p355_p7)
}
  0x11   :  { %s432_s7 = smov 128   ;;  %s433_s8 = smov 8  }
  0x12   :  { %39 = dma.hbm_to_vmem [thread:$0]  %s545_s3, 256, %s34_s22, [#allocation6], %s432_s7, %s432_s7, %s433_s8  }
  0x13   :  { %s434_s11 = smov [#allocation2]   ;;  %s435_s13 = smov [#allocation7]  }
  0x14   :  { %s20_s12 = sshll.u32 %s434_s11, 4  ;;  %s45_s14 = sshll.u32 %s435_s13, 4  ;;  %s21_s12 = int_to_ptr.vmem [resolvable:$true] %s20_s12  ;;  %s46_s14 = int_to_ptr.vmem [resolvable:$true] %s45_s14 }
  0x15   :  { %s359_s17 = scalar_lea.hbm %s542_s0, 32 }
  0x16   :  { %p360_p8 = scmp.ne.s32.totalorder %s542_s0, %s359_s17  ;;  %p363_p9 = scmp.lt.u32.totalorder %s359_s17, %s542_s0 }
  0x18   :  { %p365_p10 = pnand %p363_p9, %p360_p8 }
  0x1a   :  { %368 = shalt.err (!%p365_p10)
}
  0x1b   :  { %s369_s3 = scalar_lea.vmem %s21_s12, 32  ;;  %p374_p12 = scmp.lt.s32.totalorder %s21_s12, %s21_s12 }
  0x1c   :  { %p370_p11 = scmp.ne.s32.totalorder %s21_s12, %s369_s3  ;;  %p375_p13 = scmp.lt.s32.totalorder %s369_s3, %s369_s3 }
  0x1e   :  { %p376_p0 = por %p375_p13, %p374_p12 }
  0x20   :  { %p377_p1 = pnand %p376_p0, %p370_p11 }
  0x22   :  { %380 = shalt.err (!%p377_p1)
}
  0x23   :  { %23 = dma.hbm_to_vmem [thread:$0]  %s542_s0, 32, %s21_s12, [#allocation3]  }
  0x24   :  { %s381_s26 = scalar_lea.hbm %s546_s4, 512 }
  0x25   :  { %p382_p2 = scmp.ne.s32.totalorder %s546_s4, %s381_s26  ;;  %p385_p3 = scmp.lt.u32.totalorder %s381_s26, %s546_s4 }
  0x27   :  { %p387_p4 = pnand %p385_p3, %p382_p2 }
  0x29   :  { %390 = shalt.err (!%p387_p4)
}
  0x2a   :  { %s391_s9 = scalar_lea.vmem %s46_s14, 512  ;;  %p396_p6 = scmp.lt.s32.totalorder %s46_s14, %s46_s14 }
  0x2b   :  { %p392_p5 = scmp.ne.s32.totalorder %s46_s14, %s391_s9  ;;  %p397_p7 = scmp.lt.s32.totalorder %s391_s9, %s391_s9 }
  0x2d   :  { %p398_p8 = por %p397_p7, %p396_p6 }
  0x2f   :  { %p399_p9 = pnand %p398_p8, %p392_p5 }
  0x31   :  { %402 = shalt.err (!%p399_p9)
}
  0x32   :  { %51 = dma.hbm_to_vmem [thread:$0]  %s546_s4, 512, %s46_s14, [#allocation6], %s432_s7, %s432_s7, %s433_s8  }
  0x33   :  { %425 = dma.done.wait [#allocation3], 32  }
  0x34   :  { %426 = vsyncadd [#allocation3], 4294967264 }
  0x35   :  { %427 = dma.done.wait [#allocation6], 768  }
  0x36   :  { %428 = vsyncadd [#allocation6], 4294966528  ;;  %v436_v0 = vmov 0.0|0.0   ;;  %vm437_vm0 = vmmov 0   ;;  %v438_v1 = vmov 0.0   ;;  %v68_v2 = vld [vmem:[#allocation7] sm:$0xff] }
  0x37   :  { %309 = vmatprep.subr.bf16.mxu0 %v436_v0  ;;  %315 = vmatprep.subr.bf16.mxu1 %v436_v0  ;;  %v69_v3 = vld [vmem:[#allocation7 + $0x8] sm:$0xff]  ;;  %v66_v4 = vld [vmem:[#allocation5] sm:$0xff]  ;;  %v67_v6 = vld [vmem:[#allocation5 + $0x8] sm:$0xff]  ;;  %vm146_vm1 = vcmask 130048   ;;  %vm72_vm2 = vcmask 261120   ;;  %s439_s12 = smov 64  }
  0x38   :  { %306 = vmatprep.mubr.msk.f32.mxu1 %vm437_vm0, %v438_v1  ;;  %299 = vmatprep.mubr.msk.f32.mxu0 %vm437_vm0, %v438_v1  ;;  %v310_v5 = vpack.c.bf16 %v69_v3, %v68_v2  ;;  %v70_v7 = vld [vmem:[#allocation7 + $0x10] sm:$0xff]  ;;  %v71_v8 = vld [vmem:[#allocation7 + $0x18] sm:$0xff]  ;;  %v316_v9 = vpack.c.bf16 %v67_v6, %v66_v4  ;;  %v63_v11 = vld [vmem:[#allocation2] sm:$0x3]  ;;  %vm261_vm3 = vcmask 517120  }
  0x39   :  { %v313_v10 = vpack.c.bf16 %v71_v8, %v70_v7  ;;  %v64_v12 = vld [vmem:[%s543_s1] sm:$0x3]  ;;  %s440_s1 = smov 32  }
  0x3a   :  { %311 = vmatpush3.bf16.msra.mxu0 %v310_v5  ;;  %317 = vmatpush3.bf16.msra.mxu1 %v316_v9  ;;  %v281_v16 = vld [vmem:[%s547_s5] ss:$0 sm:$0xff] }
  0x3b   :  { %312 = vmatprep.subr.bf16.mxu0 %v436_v0  ;;  %v65_v21 = vld [vmem:[%s544_s2] sm:$0x3]  ;;  %s441_s2 = smov [#allocation8]  }
  0x3c   :  { %s269_s5 = sshll.u32 %s441_s2, 4  ;;  %s270_s5 = int_to_ptr.vmem [resolvable:$true] %s269_s5 }
  0x3d   :  { %307 = vmatmul.mubr.msk.f32.vlgmr.msra.gmra.mrb[0].mxu1 %vm146_vm1, %v63_v11  ;;  %s403_s15 = scalar_lea.vmem %s270_s5, 32  ;;  %p408_p11 = scmp.lt.s32.totalorder %s270_s5, %s270_s5 }
  0x3e   :  { %314 = vmatpush3.bf16.msra.mxu0 %v313_v10  ;;  %p404_p10 = scmp.ne.s32.totalorder %s270_s5, %s403_s15  ;;  %p409_p12 = scmp.lt.s32.totalorder %s403_s15, %s403_s15 }
  0x40   :  { %p410_p13 = por %p409_p12, %p408_p11 }
  0x41   :  { %300 = vmatmul.mubr.msk.f32.vlgmr.msra.gmra.mrb[0].mxu0 %vm72_vm2, %v64_v12 }
  0x42   :  { %p411_p0 = pnand %p410_p13, %p404_p10 }
 0x110   :  { %v216_v13 = vpop.f32.mrb[0].mxu1 }
 0x111   :  { %v308_v14 = vpop.f32.mrb[1].mxu1 }
 0x114   :  { %v142_v15 = vpop.f32.mrb[0].mxu0 }
 0x115   :  { %v217_v17 = vadd.f32 %v216_v13, %v142_v15  ;;  %v301_v18 = vpop.f32.mrb[1].mxu0 }
 0x117   :  { %v227_v19 = vadd.f32 %v281_v16, %v217_v17 }
 0x119   :  { %329 = vtanh.f32 %v227_v19  ;;  %v282_v22 = vmul.f32 -1.442695, %v227_v19 }
 0x11b   :  { %331 = vpow2.f32 %v282_v22 }
 0x123   :  { %v330_v20 = vpop.eup %329 }
 0x124   :  { %241 = vrot.lane.b32.xlu0 %v330_v20, %s439_s12 }
 0x125   :  { %v332_v23 = vpop.eup %331 }
 0x126   :  { %v231_v24 = vadd.f32 1.0, %v332_v23 }
 0x128   :  { %236 = vrot.lane.b32.xlu0 %v65_v21, %s440_s1  ;;  %333 = vrcp.f32 %v231_v24 }
 0x132   :  { %v334_v25 = vpop.eup %333 }
 0x196   :  { %v242_v26 = vpop.permute.xlu0 %241 }
 0x197   :  { %v244_v27 = vmul.f32 %v334_v25, %v242_v26 }
 0x199   :  { %246 = vrot.lane.b32.xlu1 %v244_v27, %s440_s1 }
 0x19a   :  { %v237_v28 = vpop.permute.xlu0 %236 }
 0x19b   :  { %v239_v29 = vmul.f32 %v334_v25, %v237_v28 }
 0x20b   :  { %v247_v30 = vpop.permute.xlu1 %246 }
 0x20c   :  { %v249_v31 = vadd.f32 %v247_v30, %v239_v29 }
 0x20e   :  { %335 = vtanh.f32 %v249_v31 }
 0x218   :  { %v336_v32 = vpop.eup %335 }
 0x219   :  { %252 = vrot.lane.b32.xlu1 %v336_v32, %s439_s12 }
 0x28b   :  { %v253_v33 = vpop.permute.xlu1 %252 }
 0x28c   :  { %v255_v34 = vmul.f32 %v334_v25, %v253_v33 }
 0x28e   :  { %257 = vrot.lane.b32.xlu0 %v255_v34, %s440_s1 }
 0x300   :  { %v258_v35 = vpop.permute.xlu0 %257 }
 0x301   :  { %v260_v36 = vsel %vm72_vm2, %v258_v35, %v249_v31 }
 0x302   :  { %262 = vst.msk [vmem:[#allocation8] sm:$0x3] %vm261_vm3, %v260_v36 }
 0x303   :  { %414 = shalt.err (!%p411_p0)
}
 0x304   :  { %s415_s18 = scalar_lea.hbm %s548_s6, 32 }
 0x305   :  { %p416_p1 = scmp.ne.s32.totalorder %s548_s6, %s415_s18  ;;  %p419_p2 = scmp.lt.u32.totalorder %s415_s18, %s548_s6 }
 0x307   :  { %p421_p3 = pnand %p419_p2, %p416_p1 }
 0x309   :  { %424 = shalt.err (!%p421_p3)
}
 0x30a   :  { %272 = dma.vmem_to_hbm [thread:$0]  %s270_s5, 32, %s548_s6, [#allocation4]  }
 0x30b   :  { %429 = dma.done.wait [#allocation4], 32  }
 0x30c   :  { %430 = vsyncadd [#allocation4], 4294967264 }
 0x30d   :  { %276 = vsyncpa [#allocation3], 1 }
 0x30e   :  { %277 = vsyncpa [#allocation6], 1 }
 0x30f   :  { %278 = vsyncpa [#allocation4], 1 }

</bundles_post_ra>
